<compile_context>
chip_gen: v7x
topology: tpu7x:2x2x1
jax: 0.10.0
libtpu: 0.0.40
codegen_flags: <defaults>
</compile_context>

<pallas_src>
import jax
import jax.numpy as jnp
import numpy as np
from jax.experimental import pallas as pl
from jax.experimental.pallas import tpu as pltpu


_BODY0 = 8  # scratch row where the tile body starts (sublane-aligned store)


# ------------------------------ fused kernel --------------------------------

def _bottleneck_kernel(xb_ref, xh_ref,
                       w1_ref, w2_ref, w3_ref,
                       s1_ref, b1_ref, s2_ref, b2_ref, s3_ref, b3_ref,
                       o_ref, h1_ref):
    """One (batch, H-tile) grid step.  All operands arrive lane-dense: the W
    axis is folded into the channel/lane dimension, so every matmul contracts
    over W*C and every load/store is a full-lane access."""
    i = pl.program_id(1)
    nt = pl.num_programs(1)

    TH = xb_ref.shape[1]
    WCout = w3_ref.shape[1]
    B0 = _BODY0

    xb = xb_ref[0]          # (TH, W*Cin)  body rows (lane-dense load)
    xh = xh_ref[0, 0]       # (2,  W*Cin)  halo rows (row above / below tile)

    # conv1 (1x1) + bn1 + relu.  w1 is block-diagonal over W, so the per-pixel
    # channel mix is one lane-dense matmul (K = W*Cin, N = W*width).
    h1b = jnp.dot(xb, w1_ref[...], preferred_element_type=jnp.float32)
    h1b = jnp.maximum(h1b * s1_ref[...] + b1_ref[...], 0.0)
    h1h = jnp.dot(xh, w1_ref[...], preferred_element_type=jnp.float32)
    h1h = jnp.maximum(h1h * s1_ref[...] + b1_ref[...], 0.0)

    # Halo rows that are conv2's zero padding (tile at the image border) must
    # be exactly zero (the padding applies to h1, after conv1/bn1/relu).
    # Two scalar-predicated row scales -- no full-tile pad mask.
    top = h1h[0:1] * jnp.where(i == 0, 0.0, 1.0)
    bot = h1h[1:2] * jnp.where(i == nt - 1, 0.0, 1.0)

    # Assemble the row-haloed h1 in VMEM.  No zero fill (every row that is read
    # this step is also written this step) and the TH-row body store is
    # sublane-aligned at row 8.  No pl.when-gated init -> megacore safe.
    h1_ref[B0:B0 + TH, :] = h1b
    h1_ref[B0 - 1:B0, :] = top
    h1_ref[B0 + TH:B0 + TH + 1, :] = bot

    # conv2 (3x3, pad=1, stride=1) + bn2 + relu.  The 3 kw taps and the W
    # zero-border are folded into a block-tridiagonal weight, so the 9 skinny
    # matmuls collapse to 3 matmuls with K = N = W*width and no W padding.
    acc = jnp.dot(h1_ref[B0 - 1:B0 - 1 + TH, :], w2_ref[0],
                  preferred_element_type=jnp.float32)
    acc = acc + jnp.dot(h1_ref[B0:B0 + TH, :], w2_ref[1],
                        preferred_element_type=jnp.float32)
    acc = acc + jnp.dot(h1_ref[B0 + 1:B0 + 1 + TH, :], w2_ref[2],
                        preferred_element_type=jnp.float32)
    h2 = jnp.maximum(acc * s2_ref[...] + b2_ref[...], 0.0)

    # conv3 (1x1) + bn3 + residual add + relu; the residual never leaves VMEM.
    y = jnp.dot(h2, w3_ref[...], preferred_element_type=jnp.float32)
    y = jnp.maximum(y * s3_ref[...] + b3_ref[...] + xb, 0.0)
    o_ref[...] = y.reshape(1, TH, WCout).astype(o_ref.dtype)   # lane-dense store


# ------------------------------ host wrapper ---------------------------------

def fold_bn(gamma, beta, mean, var, eps=1e-5):
    scale = gamma / jnp.sqrt(var + eps)
    bias = beta - mean * scale
    return (scale.reshape(1, -1).astype(jnp.float32),
            bias.reshape(1, -1).astype(jnp.float32))


def _pick_tile_h(H, W, Cin, width, Cout, budget_bytes=16 << 20):
    """Largest H-tile whose per-step VMEM footprint (double-buffered in/out
    blocks + row-halo scratch + in-flight values, f32) fits the budget."""
    cands = [d for d in range(H, 0, -1) if H % d == 0 and (d == H or d % 8 == 0)]
    for th in cands:
        blocks = 2 * (th * W * Cin + 2 * W * Cin + th * W * Cout)  # pipelined I/O
        scratch = (_BODY0 + th + 1) * W * width
        live = 6 * th * W * max(width, Cout)                       # loose estimate
        if 4 * (blocks + scratch + live) <= budget_bytes:
            return th
    return cands[-1]


def bottleneck_forward(x_nchw, p, *, tile_h=None):
    """Bottleneck forward.  x_nchw: (N, C, H, W) float32.  Returns NCHW."""
    x = jnp.transpose(x_nchw, (0, 2, 3, 1)).astype(jnp.float32)   # NCHW -> NHWC
    N, H, W, Cin = x.shape
    width = p["w1"].shape[1]
    Cout = p["w3"].shape[1]
    assert Cin == Cout, (
        "residual add without downsample requires in_c == out_c * expansion")
    WCin, Wwidth, WCout = W * Cin, W * width, W * Cout

    th = tile_h if tile_h is not None else _pick_tile_h(H, W, Cin, width, Cout)
    assert H % th == 0 and (th == H or th % 8 == 0), (H, th)
    nt = H // th

    # Lane-dense flattening: fold W into the channel / lane dimension.
    x_flat = x.reshape(N, H, WCin)                     # (N, H, W*Cin)

    # Halo rows (one above / below each H-tile); zeros at the image border.
    # Replaces the old full jnp.pad of x (no extra HBM pass over the input).
    zrow = jnp.zeros((N, 1, WCin), x.dtype)
    if nt > 1:
        top = jnp.concatenate([zrow, x_flat[:, th - 1:H - 1:th]], axis=1)
        bot = jnp.concatenate([x_flat[:, th:H:th], zrow], axis=1)
    else:
        top, bot = zrow, zrow
    halo = jnp.stack([top, bot], axis=2)               # (N, nt, 2, W*Cin)

    # Fold W into the matmul weights: block-diagonal for the 1x1 convs,
    # block-tridiagonal (kw taps + W zero-border) for the 3x3 conv.
    eyeW = jnp.eye(W, dtype=jnp.float32)
    w1bd = (eyeW[:, None, :, None] * p["w1"][None, :, None, :]).reshape(WCin, Wwidth)
    w3bd = (eyeW[:, None, :, None] * p["w3"][None, :, None, :]).reshape(Wwidth, WCout)
    cols = jnp.arange(W)
    shift = jnp.stack(
        [(cols[:, None] == cols[None, :] + kw - 1).astype(jnp.float32)
         for kw in range(3)], axis=0)                  # (3, W_in, W_out)
    w2bd = jnp.einsum("kpw,hkcd->hpcwd", shift, p["w2"]).reshape(3, Wwidth, Wwidth)

    s1t, b1t = jnp.tile(p["s1"], (1, W)), jnp.tile(p["b1"], (1, W))
    s2t, b2t = jnp.tile(p["s2"], (1, W)), jnp.tile(p["b2"], (1, W))
    s3t, b3t = jnp.tile(p["s3"], (1, W)), jnp.tile(p["b3"], (1, W))

    vmem = pltpu.MemorySpace.VMEM
    out = pl.pallas_call(
        _bottleneck_kernel,
        out_shape=jax.ShapeDtypeStruct((N, H, WCout), jnp.float32),
        grid_spec=pltpu.PrefetchScalarGridSpec(
            num_scalar_prefetch=0,
            grid=(N, nt),
            in_specs=[
                pl.BlockSpec((1, th, WCin), lambda n, i: (n, i, 0)),       # body
                pl.BlockSpec((1, 1, 2, WCin), lambda n, i: (n, i, 0, 0)),  # halo
                pl.BlockSpec(memory_space=vmem),   # w1 (block-diag over W)
                pl.BlockSpec(memory_space=vmem),   # w2 (block-tridiagonal, 3 x)
                pl.BlockSpec(memory_space=vmem),   # w3 (block-diag over W)
                pl.BlockSpec(memory_space=vmem),   # s1
                pl.BlockSpec(memory_space=vmem),   # b1
                pl.BlockSpec(memory_space=vmem),   # s2
                pl.BlockSpec(memory_space=vmem),   # b2
                pl.BlockSpec(memory_space=vmem),   # s3
                pl.BlockSpec(memory_space=vmem),   # b3
            ],
            out_specs=pl.BlockSpec((1, th, WCout), lambda n, i: (n, i, 0)),
            scratch_shapes=[pltpu.VMEM((_BODY0 + th + 1, Wwidth), jnp.float32)],
        ),
        compiler_params=pltpu.CompilerParams(
            dimension_semantics=("parallel", "parallel"),
            vmem_limit_bytes=32 * 1024 * 1024),
    )(x_flat, halo, w1bd, w2bd, w3bd, s1t, b1t, s2t, b2t, s3t, b3t)

    out = out.reshape(N, H, W, Cout)
    return jnp.transpose(out, (0, 3, 1, 2))            # NHWC -> NCHW


# ------------------------------ pure-JAX reference ---------------------------

def bottleneck_reference(x_nchw, p):
    x = jnp.transpose(x_nchw, (0, 2, 3, 1)).astype(jnp.float32)
    N, H, W, Cin = x.shape
    h1 = jnp.maximum(jnp.einsum("nhwc,cd->nhwd", x, p["w1"]) * p["s1"] + p["b1"], 0.0)
    hp = jnp.pad(h1, ((0, 0), (1, 1), (1, 1), (0, 0)))
    h2 = jnp.zeros((N, H, W, p["w2"].shape[-1]), jnp.float32)
    for kh in range(3):
        for kw in range(3):
            h2 = h2 + jnp.einsum("nhwc,cd->nhwd",
                                 hp[:, kh:kh + H, kw:kw + W, :], p["w2"][kh, kw])
    h2 = jnp.maximum(h2 * p["s2"] + p["b2"], 0.0)
    h3 = jnp.einsum("nhwc,cd->nhwd", h2, p["w3"]) * p["s3"] + p["b3"] + x
    out = jnp.maximum(h3, 0.0)
    return jnp.transpose(out, (0, 3, 1, 2))


# ----------------------------------- main ------------------------------------

if __name__ == "__main__":
    # Module config (stride=1, groups=1, base_width=64, downsample=None).
    out_c = 4
    expansion = 4
    in_c = out_c * expansion          # 16
    width = out_c                     # int(out_c * 64/64) * 1 = 4
    N, H, W = 2, 16, 16

    key = jax.random.PRNGKey(0)
    ks = jax.random.split(key, 8)

    # Conv weights (bias=False) in matmul-friendly layouts:
    #   w1: (in_c, width)            <- PyTorch (width, in_c, 1, 1)
    #   w2: (3, 3, width, width)     <- PyTorch (width, width, 3, 3)
    #   w3: (width, out_c*expansion) <- PyTorch (out_c*4, width, 1, 1)
    w1 = jax.random.normal(ks[0], (in_c, width), jnp.float32) * 0.1
    w2 = jax.random.normal(ks[1], (3, 3, width, width), jnp.float32) * 0.1
    w3 = jax.random.normal(ks[2], (width, out_c * expansion), jnp.float32) * 0.1

    def bn_params(k, c):
        k1, k2, k3, k4 = jax.random.split(k, 4)
        gamma = 1.0 + 0.1 * jax.random.normal(k1, (c,), jnp.float32)
        beta = 0.1 * jax.random.normal(k2, (c,), jnp.float32)
        mean = 0.1 * jax.random.normal(k3, (c,), jnp.float32)
        var = 1.0 + 0.1 * jax.random.uniform(k4, (c,), jnp.float32)
        return fold_bn(gamma, beta, mean, var)

    s1, b1 = bn_params(ks[3], width)
    s2, b2 = bn_params(ks[4], width)
    s3, b3 = bn_params(ks[5], out_c * expansion)

    params = dict(w1=w1, w2=w2, w3=w3, s1=s1, b1=b1, s2=s2, b2=b2, s3=s3, b3=b3)

    x = jax.random.normal(ks[6], (N, in_c, H, W), jnp.float32)

    out = jax.block_until_ready(bottleneck_forward(x, params))
    ref = jax.block_until_ready(bottleneck_reference(x, params))

    assert out.shape == (N, out_c * expansion, H, W), out.shape
    np.testing.assert_allclose(np.asarray(out), np.asarray(ref), rtol=1e-4, atol=1e-4)

    print("KERNEL_OK")
</pallas_src>

<mosaic_0001>
module attributes {stable_mosaic.version = 11 : i64} {
  func.func @_bottleneck_kernel(%arg0: i32, %arg1: i32, %arg2: memref<1x16x256xf32, #tpu.memory_space<vmem>>, %arg3: memref<1x1x2x256xf32, #tpu.memory_space<vmem>>, %arg4: memref<256x64xf32, #tpu.memory_space<vmem>>, %arg5: memref<3x64x64xf32, #tpu.memory_space<vmem>>, %arg6: memref<64x256xf32, #tpu.memory_space<vmem>>, %arg7: memref<1x64xf32, #tpu.memory_space<vmem>>, %arg8: memref<1x64xf32, #tpu.memory_space<vmem>>, %arg9: memref<1x64xf32, #tpu.memory_space<vmem>>, %arg10: memref<1x64xf32, #tpu.memory_space<vmem>>, %arg11: memref<1x256xf32, #tpu.memory_space<vmem>>, %arg12: memref<1x256xf32, #tpu.memory_space<vmem>>, %arg13: memref<1x16x256xf32, #tpu.memory_space<vmem>>, %arg14: memref<25x64xf32, #tpu.memory_space<vmem>>) attributes {dimension_semantics = [#tpu.dimension_semantics<parallel>, #tpu.dimension_semantics<parallel>], iteration_bounds = array<i64: 2, 1>, scalar_prefetch = 0 : i64, scratch_operands = 1 : i64, tpu.core_type = #tpu.core_type<tc>, window_params = [{transform_indices = @transform_0, window_bounds = array<i64: 1, 16, 256>}, {transform_indices = @transform_1, window_bounds = array<i64: 1, 1, 2, 256>}, {pipeline_mode = #tpu.pipeline_mode<synchronous>, transform_indices = @transform_2, window_bounds = array<i64: 256, 64>}, {pipeline_mode = #tpu.pipeline_mode<synchronous>, transform_indices = @transform_3, window_bounds = array<i64: 3, 64, 64>}, {pipeline_mode = #tpu.pipeline_mode<synchronous>, transform_indices = @transform_4, window_bounds = array<i64: 64, 256>}, {pipeline_mode = #tpu.pipeline_mode<synchronous>, transform_indices = @transform_5, window_bounds = array<i64: 1, 64>}, {pipeline_mode = #tpu.pipeline_mode<synchronous>, transform_indices = @transform_6, window_bounds = array<i64: 1, 64>}, {pipeline_mode = #tpu.pipeline_mode<synchronous>, transform_indices = @transform_7, window_bounds = array<i64: 1, 64>}, {pipeline_mode = #tpu.pipeline_mode<synchronous>, transform_indices = @transform_8, window_bounds = array<i64: 1, 64>}, {pipeline_mode = #tpu.pipeline_mode<synchronous>, transform_indices = @transform_9, window_bounds = array<i64: 1, 256>}, {pipeline_mode = #tpu.pipeline_mode<synchronous>, transform_indices = @transform_10, window_bounds = array<i64: 1, 256>}, {transform_indices = @transform_11, window_bounds = array<i64: 1, 16, 256>}]} {
    %c0 = arith.constant 0 : index
    %c0_0 = arith.constant 0 : index
    %c0_1 = arith.constant 0 : index
    %0 = vector.load %arg2[%c0, %c0_0, %c0_1] : memref<1x16x256xf32, #tpu.memory_space<vmem>>, vector<1x16x256xf32>
    %1 = vector.shape_cast %0 : vector<1x16x256xf32> to vector<16x256xf32>
    %c0_2 = arith.constant 0 : index
    %c0_3 = arith.constant 0 : index
    %c0_4 = arith.constant 0 : index
    %c0_5 = arith.constant 0 : index
    %2 = vector.load %arg3[%c0_2, %c0_3, %c0_4, %c0_5] : memref<1x1x2x256xf32, #tpu.memory_space<vmem>>, vector<1x1x2x256xf32>
    %3 = vector.shape_cast %2 : vector<1x1x2x256xf32> to vector<2x256xf32>
    %c0_6 = arith.constant 0 : index
    %c0_7 = arith.constant 0 : index
    %4 = vector.load %arg4[%c0_6, %c0_7] : memref<256x64xf32, #tpu.memory_space<vmem>>, vector<256x64xf32>
    %cst = arith.constant dense<0.000000e+00> : vector<16x64xf32>
    %5 = tpu.matmul %1, %4, %cst {dimension_numbers = #tpu.dot_dimension_numbers<[1], [0], [0], [1], [0, 0, 1, 1], [], []>} : vector<16x256xf32>, vector<256x64xf32>, vector<16x64xf32> -> vector<16x64xf32>
    %c0_8 = arith.constant 0 : index
    %c0_9 = arith.constant 0 : index
    %6 = vector.load %arg7[%c0_8, %c0_9] : memref<1x64xf32, #tpu.memory_space<vmem>>, vector<1x64xf32>
    %7 = vector.broadcast %6 : vector<1x64xf32> to vector<16x64xf32>
    %8 = arith.mulf %5, %7 : vector<16x64xf32>
    %c0_10 = arith.constant 0 : index
    %c0_11 = arith.constant 0 : index
    %9 = vector.load %arg8[%c0_10, %c0_11] : memref<1x64xf32, #tpu.memory_space<vmem>>, vector<1x64xf32>
    %10 = vector.broadcast %9 : vector<1x64xf32> to vector<16x64xf32>
    %11 = arith.addf %8, %10 : vector<16x64xf32>
    %cst_12 = arith.constant 0.000000e+00 : f32
    %12 = vector.broadcast %cst_12 : f32 to vector<16x64xf32>
    %13 = arith.maximumf %11, %12 : vector<16x64xf32>
    %c0_13 = arith.constant 0 : index
    %c0_14 = arith.constant 0 : index
    %14 = vector.load %arg4[%c0_13, %c0_14] : memref<256x64xf32, #tpu.memory_space<vmem>>, vector<256x64xf32>
    %cst_15 = arith.constant dense<0.000000e+00> : vector<2x64xf32>
    %15 = tpu.matmul %3, %14, %cst_15 {dimension_numbers = #tpu.dot_dimension_numbers<[1], [0], [0], [1], [0, 0, 1, 1], [], []>} : vector<2x256xf32>, vector<256x64xf32>, vector<2x64xf32> -> vector<2x64xf32>
    %c0_16 = arith.constant 0 : index
    %c0_17 = arith.constant 0 : index
    %16 = vector.load %arg7[%c0_16, %c0_17] : memref<1x64xf32, #tpu.memory_space<vmem>>, vector<1x64xf32>
    %17 = vector.broadcast %16 : vector<1x64xf32> to vector<2x64xf32>
    %18 = arith.mulf %15, %17 : vector<2x64xf32>
    %c0_18 = arith.constant 0 : index
    %c0_19 = arith.constant 0 : index
    %19 = vector.load %arg8[%c0_18, %c0_19] : memref<1x64xf32, #tpu.memory_space<vmem>>, vector<1x64xf32>
    %20 = vector.broadcast %19 : vector<1x64xf32> to vector<2x64xf32>
    %21 = arith.addf %18, %20 : vector<2x64xf32>
    %cst_20 = arith.constant 0.000000e+00 : f32
    %22 = vector.broadcast %cst_20 : f32 to vector<2x64xf32>
    %23 = arith.maximumf %21, %22 : vector<2x64xf32>
    %24 = vector.extract_strided_slice %23 {offsets = [0, 0], sizes = [1, 64], strides = [1, 1]} : vector<2x64xf32> to vector<1x64xf32>
    %c0_i32 = arith.constant 0 : i32
    %25 = arith.cmpi eq, %arg1, %c0_i32 : i32
    %cst_21 = arith.constant 0.000000e+00 : f32
    %cst_22 = arith.constant 1.000000e+00 : f32
    %26 = arith.select %25, %cst_21, %cst_22 : f32
    %27 = vector.broadcast %26 : f32 to vector<1x64xf32>
    %28 = arith.mulf %24, %27 : vector<1x64xf32>
    %29 = vector.extract_strided_slice %23 {offsets = [1, 0], sizes = [1, 64], strides = [1, 1]} : vector<2x64xf32> to vector<1x64xf32>
    %c0_i32_23 = arith.constant 0 : i32
    %30 = arith.cmpi eq, %arg1, %c0_i32_23 : i32
    %cst_24 = arith.constant 0.000000e+00 : f32
    %cst_25 = arith.constant 1.000000e+00 : f32
    %31 = arith.select %30, %cst_24, %cst_25 : f32
    %32 = vector.broadcast %31 : f32 to vector<1x64xf32>
    %33 = arith.mulf %29, %32 : vector<1x64xf32>
    %c8 = arith.constant 8 : index
    %c0_26 = arith.constant 0 : index
    %34 = vector.load %arg14[%c8, %c0_26] : memref<25x64xf32, #tpu.memory_space<vmem>>, vector<16x64xf32>
    tpu.vector_store %arg14[%c8, %c0_26], %13 {strides = array<i32>} : memref<25x64xf32, #tpu.memory_space<vmem>>, vector<16x64xf32>,
    %c7 = arith.constant 7 : index
    %c0_27 = arith.constant 0 : index
    %35 = vector.load %arg14[%c7, %c0_27] : memref<25x64xf32, #tpu.memory_space<vmem>>, vector<1x64xf32>
    tpu.vector_store %arg14[%c7, %c0_27], %28 {strides = array<i32>} : memref<25x64xf32, #tpu.memory_space<vmem>>, vector<1x64xf32>,
    %c24 = arith.constant 24 : index
    %c0_28 = arith.constant 0 : index
    %36 = vector.load %arg14[%c24, %c0_28] : memref<25x64xf32, #tpu.memory_space<vmem>>, vector<1x64xf32>
    tpu.vector_store %arg14[%c24, %c0_28], %33 {strides = array<i32>} : memref<25x64xf32, #tpu.memory_space<vmem>>, vector<1x64xf32>,
    %c7_29 = arith.constant 7 : index
    %c0_30 = arith.constant 0 : index
    %37 = vector.load %arg14[%c7_29, %c0_30] : memref<25x64xf32, #tpu.memory_space<vmem>>, vector<16x64xf32>
    %c0_31 = arith.constant 0 : index
    %c0_32 = arith.constant 0 : index
    %c0_33 = arith.constant 0 : index
    %38 = vector.load %arg5[%c0_31, %c0_32, %c0_33] : memref<3x64x64xf32, #tpu.memory_space<vmem>>, vector<1x64x64xf32>
    %39 = vector.shape_cast %38 : vector<1x64x64xf32> to vector<64x64xf32>
    %cst_34 = arith.constant dense<0.000000e+00> : vector<16x64xf32>
    %40 = tpu.matmul %37, %39, %cst_34 {dimension_numbers = #tpu.dot_dimension_numbers<[1], [0], [0], [1], [0, 0, 1, 1], [], []>} : vector<16x64xf32>, vector<64x64xf32>, vector<16x64xf32> -> vector<16x64xf32>
    %c8_35 = arith.constant 8 : index
    %c0_36 = arith.constant 0 : index
    %41 = vector.load %arg14[%c8_35, %c0_36] : memref<25x64xf32, #tpu.memory_space<vmem>>, vector<16x64xf32>
    %c1 = arith.constant 1 : index
    %c0_37 = arith.constant 0 : index
    %c0_38 = arith.constant 0 : index
    %42 = vector.load %arg5[%c1, %c0_37, %c0_38] : memref<3x64x64xf32, #tpu.memory_space<vmem>>, vector<1x64x64xf32>
    %43 = vector.shape_cast %42 : vector<1x64x64xf32> to vector<64x64xf32>
    %cst_39 = arith.constant dense<0.000000e+00> : vector<16x64xf32>
    %44 = tpu.matmul %41, %43, %cst_39 {dimension_numbers = #tpu.dot_dimension_numbers<[1], [0], [0], [1], [0, 0, 1, 1], [], []>} : vector<16x64xf32>, vector<64x64xf32>, vector<16x64xf32> -> vector<16x64xf32>
    %45 = arith.addf %40, %44 : vector<16x64xf32>
    %c9 = arith.constant 9 : index
    %c0_40 = arith.constant 0 : index
    %46 = vector.load %arg14[%c9, %c0_40] : memref<25x64xf32, #tpu.memory_space<vmem>>, vector<16x64xf32>
    %c2 = arith.constant 2 : index
    %c0_41 = arith.constant 0 : index
    %c0_42 = arith.constant 0 : index
    %47 = vector.load %arg5[%c2, %c0_41, %c0_42] : memref<3x64x64xf32, #tpu.memory_space<vmem>>, vector<1x64x64xf32>
    %48 = vector.shape_cast %47 : vector<1x64x64xf32> to vector<64x64xf32>
    %cst_43 = arith.constant dense<0.000000e+00> : vector<16x64xf32>
    %49 = tpu.matmul %46, %48, %cst_43 {dimension_numbers = #tpu.dot_dimension_numbers<[1], [0], [0], [1], [0, 0, 1, 1], [], []>} : vector<16x64xf32>, vector<64x64xf32>, vector<16x64xf32> -> vector<16x64xf32>
    %50 = arith.addf %45, %49 : vector<16x64xf32>
    %c0_44 = arith.constant 0 : index
    %c0_45 = arith.constant 0 : index
    %51 = vector.load %arg9[%c0_44, %c0_45] : memref<1x64xf32, #tpu.memory_space<vmem>>, vector<1x64xf32>
    %52 = vector.broadcast %51 : vector<1x64xf32> to vector<16x64xf32>
    %53 = arith.mulf %50, %52 : vector<16x64xf32>
    %c0_46 = arith.constant 0 : index
    %c0_47 = arith.constant 0 : index
    %54 = vector.load %arg10[%c0_46, %c0_47] : memref<1x64xf32, #tpu.memory_space<vmem>>, vector<1x64xf32>
    %55 = vector.broadcast %54 : vector<1x64xf32> to vector<16x64xf32>
    %56 = arith.addf %53, %55 : vector<16x64xf32>
    %cst_48 = arith.constant 0.000000e+00 : f32
    %57 = vector.broadcast %cst_48 : f32 to vector<16x64xf32>
    %58 = arith.maximumf %56, %57 : vector<16x64xf32>
    %c0_49 = arith.constant 0 : index
    %c0_50 = arith.constant 0 : index
    %59 = vector.load %arg6[%c0_49, %c0_50] : memref<64x256xf32, #tpu.memory_space<vmem>>, vector<64x256xf32>
    %cst_51 = arith.constant dense<0.000000e+00> : vector<16x256xf32>
    %60 = tpu.matmul %58, %59, %cst_51 {dimension_numbers = #tpu.dot_dimension_numbers<[1], [0], [0], [1], [0, 0, 1, 1], [], []>} : vector<16x64xf32>, vector<64x256xf32>, vector<16x256xf32> -> vector<16x256xf32>
    %c0_52 = arith.constant 0 : index
    %c0_53 = arith.constant 0 : index
    %61 = vector.load %arg11[%c0_52, %c0_53] : memref<1x256xf32, #tpu.memory_space<vmem>>, vector<1x256xf32>
    %62 = vector.broadcast %61 : vector<1x256xf32> to vector<16x256xf32>
    %63 = arith.mulf %60, %62 : vector<16x256xf32>
    %c0_54 = arith.constant 0 : index
    %c0_55 = arith.constant 0 : index
    %64 = vector.load %arg12[%c0_54, %c0_55] : memref<1x256xf32, #tpu.memory_space<vmem>>, vector<1x256xf32>
    %65 = vector.broadcast %64 : vector<1x256xf32> to vector<16x256xf32>
    %66 = arith.addf %63, %65 : vector<16x256xf32>
    %67 = arith.addf %66, %1 : vector<16x256xf32>
    %cst_56 = arith.constant 0.000000e+00 : f32
    %68 = vector.broadcast %cst_56 : f32 to vector<16x256xf32>
    %69 = arith.maximumf %67, %68 : vector<16x256xf32>
    %70 = vector.shape_cast %69 : vector<16x256xf32> to vector<1x16x256xf32>
    %c0_57 = arith.constant 0 : index
    %c0_58 = arith.constant 0 : index
    %c0_59 = arith.constant 0 : index
    %71 = vector.load %arg13[%c0_57, %c0_58, %c0_59] : memref<1x16x256xf32, #tpu.memory_space<vmem>>, vector<1x16x256xf32>
    tpu.vector_store %arg13[%c0_57, %c0_58, %c0_59], %70 {strides = array<i32>} : memref<1x16x256xf32, #tpu.memory_space<vmem>>, vector<1x16x256xf32>,
    return
  }
  func.func @transform_0(%arg0: i32, %arg1: i32) -> (i32, i32, i32) {
    %c0_i32 = arith.constant 0 : i32
    %c0_i32_0 = arith.constant 0 : i32
    return %arg0, %arg1, %c0_i32 : i32, i32, i32
  }
  func.func @transform_1(%arg0: i32, %arg1: i32) -> (i32, i32, i32, i32) {
    %c0_i32 = arith.constant 0 : i32
    %c0_i32_0 = arith.constant 0 : i32
    %c0_i32_1 = arith.constant 0 : i32
    return %arg0, %arg1, %c0_i32, %c0_i32_0 : i32, i32, i32, i32
  }
  func.func @transform_2(%arg0: i32, %arg1: i32) -> (i32, i32) {
    %c0_i32 = arith.constant 0 : i32
    %c0_i32_0 = arith.constant 0 : i32
    %c0_i32_1 = arith.constant 0 : i32
    return %c0_i32, %c0_i32_0 : i32, i32
  }
  func.func @transform_3(%arg0: i32, %arg1: i32) -> (i32, i32, i32) {
    %c0_i32 = arith.constant 0 : i32
    %c0_i32_0 = arith.constant 0 : i32
    %c0_i32_1 = arith.constant 0 : i32
    %c0_i32_2 = arith.constant 0 : i32
    return %c0_i32, %c0_i32_0, %c0_i32_1 : i32, i32, i32
  }
  func.func @transform_4(%arg0: i32, %arg1: i32) -> (i32, i32) {
    %c0_i32 = arith.constant 0 : i32
    %c0_i32_0 = arith.constant 0 : i32
    %c0_i32_1 = arith.constant 0 : i32
    return %c0_i32, %c0_i32_0 : i32, i32
  }
  func.func @transform_5(%arg0: i32, %arg1: i32) -> (i32, i32) {
    %c0_i32 = arith.constant 0 : i32
    %c0_i32_0 = arith.constant 0 : i32
    %c0_i32_1 = arith.constant 0 : i32
    return %c0_i32, %c0_i32_0 : i32, i32
  }
  func.func @transform_6(%arg0: i32, %arg1: i32) -> (i32, i32) {
    %c0_i32 = arith.constant 0 : i32
    %c0_i32_0 = arith.constant 0 : i32
    %c0_i32_1 = arith.constant 0 : i32
    return %c0_i32, %c0_i32_0 : i32, i32
  }
  func.func @transform_7(%arg0: i32, %arg1: i32) -> (i32, i32) {
    %c0_i32 = arith.constant 0 : i32
    %c0_i32_0 = arith.constant 0 : i32
    %c0_i32_1 = arith.constant 0 : i32
    return %c0_i32, %c0_i32_0 : i32, i32
  }
  func.func @transform_8(%arg0: i32, %arg1: i32) -> (i32, i32) {
    %c0_i32 = arith.constant 0 : i32
    %c0_i32_0 = arith.constant 0 : i32
    %c0_i32_1 = arith.constant 0 : i32
    return %c0_i32, %c0_i32_0 : i32, i32
  }
  func.func @transform_9(%arg0: i32, %arg1: i32) -> (i32, i32) {
    %c0_i32 = arith.constant 0 : i32
    %c0_i32_0 = arith.constant 0 : i32
    %c0_i32_1 = arith.constant 0 : i32
    return %c0_i32, %c0_i32_0 : i32, i32
  }
  func.func @transform_10(%arg0: i32, %arg1: i32) -> (i32, i32) {
    %c0_i32 = arith.constant 0 : i32
    %c0_i32_0 = arith.constant 0 : i32
    %c0_i32_1 = arith.constant 0 : i32
    return %c0_i32, %c0_i32_0 : i32, i32
  }
  func.func @transform_11(%arg0: i32, %arg1: i32) -> (i32, i32, i32) {
    %c0_i32 = arith.constant 0 : i32
    %c0_i32_0 = arith.constant 0 : i32
    return %arg0, %arg1, %c0_i32 : i32, i32, i32
  }
}

</mosaic_0001>

<bundles_post_ra>
// kernel: tpu_custom_call.1
= control target key start
LH: loop header
LB: loop body
LE: loop exit
PB: predicated region body
PF: predicated region fallthrough
CT: control target
= control target key end

     0   :  { %s2287_s0 = inlined_call_operand.vmem [shape: f32[2,16,256], index: 0, kind: input, shape index: {}]   ;;  %s2288_s1 = inlined_call_operand.hbm [shape: f32[2,1,2,256], index: 1, kind: input, shape index: {}]   ;;  %s2289_s2 = inlined_call_operand.vmem [shape: f32[256,64], index: 2, kind: input, shape index: {}]   ;;  %s2290_s3 = inlined_call_operand.vmem [shape: f32[3,64,64], index: 3, kind: input, shape index: {}]   ;;  %s2291_s4 = inlined_call_operand.vmem [shape: f32[64,256], index: 4, kind: input, shape index: {}]   ;;  %s2292_s5 = inlined_call_operand.vmem [shape: f32[1,64], index: 5, kind: input, shape index: {}]   ;;  %s2293_s6 = inlined_call_operand.vmem [shape: f32[1,64], index: 6, kind: input, shape index: {}]   ;;  %s2294_s7 = inlined_call_operand.vmem [shape: f32[1,64], index: 7, kind: input, shape index: {}]   ;;  %s2295_s8 = inlined_call_operand.vmem [shape: f32[1,64], index: 8, kind: input, shape index: {}]   ;;  %s2296_s9 = inlined_call_operand.vmem [shape: f32[1,256], index: 9, kind: input, shape index: {}]   ;;  %s2297_s10 = inlined_call_operand.vmem [shape: f32[1,256], index: 10, kind: input, shape index: {}]   ;;  %s2298_s11 = inlined_call_operand.hbm [shape: f32[2,16,256], index: 11, kind: output, shape index: {}]  }
   0x1   :  { %2303 = sst [smem:[#allocation13_spill]] %s2288_s1 }
   0x2   :  { %16 = vsyncpa [#allocation4], 0 }
   0x3   :  { %18 = vsyncpa [#allocation4 + $0x1], 0 }
   0x4   :  { %19 = vsyncpa [#allocation5], 0 }
   0x5   :  { %21 = vsyncpa [#allocation5 + $0x1], 0  ;;  %s1838_s17 = smov 0   ;;  %s1840_s18 = smov 0  }
   0x6   :  { %s1842_s19 = smov 0   ;;  %s1844_s20 = smov 0  }
   0x7   :  { %s1846_s21 = smov 0   ;;  %s1848_s22 = smov 0  }
   0x8 LB: > { %2304 = sst [smem:[#allocation9_spill]] %s1759_s19  ;;  %s1253_s23 = sadd.s32 4294967295, %s1771_s22   ;;  %s1771_s22 = sphi %s1848_s22, %s27_s22   ;;  %s1767_s21 = sphi %s1846_s21, %s2322_s21   ;;  %s1763_s20 = sphi %s1844_s20, %s2321_s20   ;;  %s1759_s19 = sphi %s1842_s19, %s2320_s19   ;;  %s1755_s18 = sphi %s1840_s18, %s2324_s18   ;;  %s1751_s17 = sphi %s1838_s17, %s2323_s17  }
   0x9   : > { %2305 = sst [smem:[#allocation10_spill]] %s1767_s21  ;;  %s1254_s24 = sadd.s32 4294967294, %s1771_s22  }
   0xa   : > { %s39_s25 = sadd.s32 1, %s1767_s21  ;;  %s76_s26 = sadd.s32 1, %s1759_s19 }
   0xb   : > { %p41_p0 = scmp.ge.s32.totalorder %s39_s25, 2  ;;  %p83_p1 = scmp.ne.s32.totalorder %s1759_s19, %s1755_s18 }
   0xc   : > { %p84_p2 = scmp.eq.s32.totalorder %s1771_s22, 0  ;;  %p89_p3 = scmp.ne.s32.totalorder %s1755_s18, %s1751_s17 }
   0xd   : > { %s2326_s25 = smov (%p41_p0, %s39_s25), 0  ;;  %p90_p5 = scmp.eq.s32.totalorder %s1253_s23, 0 }
   0xe   : > { %2306 = sst [smem:[#allocation11_spill]] %s2326_s25  ;;  %p1879_p4 = por %p84_p2, %p83_p1 }
   0xf   : > { %s71_s28 = ssub.s32 %s1767_s21, %s2326_s25  ;;  %p304_p6 = scmp.eq.s32.totalorder %s1253_s23, 1 }
  0x10   : > { %p74_p7 = scmp.eq.s32.totalorder %s71_s28, 0  ;;  %p1885_p8 = por %p90_p5, %p89_p3 }
  0x11   : > { %p1889_p9 = por %p304_p6, %p83_p1  ;;  %p310_p10 = scmp.eq.s32.totalorder %s1254_s24, 1 }
  0x12   : > { %s1894_s12 = scalar_select %p74_p7, %s1759_s19, %s76_s26  }
  0x13   : > { %s2309_s30 = scalar_select %p1889_p9, 1, 0 }
  0x14   : > { %2310 = sst [smem:[#allocation12_spill]] %s1894_s12  ;;  %p1896_p11 = por %p310_p10, %p89_p3 }
  0x15   : > { %p1606_p13 = scmp.lt.s32.totalorder %s1771_s22, 2  ;;  %s371_s14 = sand.u32 1, %s1759_s19  }
  0x16   : > { %s2311_s13 = scalar_select %p1896_p11, 1, 0 }
  0x17   : > { %s1257_s15 = sshll.u32 %s371_s14, 2  ;;  %s1299_s16 = sshll.u32 %s1767_s21, 6 }
  0x18   : > { %s2312_s1 = sld [smem:[#allocation13_spill]]  ;;  %s375_s24 = scalar_lea.vmem [#allocation3], %s1257_s15 }
  0x19   : > { %s385_s26 = sshll.u32 %s375_s24, 4  ;;  %p1913_p0 = pnand %p1606_p13, %p1879_p4  ;;  %s1909_s26 = int_to_ptr.vmem [resolvable:$true] %s385_s26 }
  0x1a   : > { %s372_s23 = scalar_lea.sflag [#allocation4], %s371_s14 }
  0x1b   : > { %p1661_p5 = pneg %p1913_p0 }
  0x1e   : > { %s1907_s25 = scalar_lea.hbm %s2312_s1, %s1299_s16  ;;  %s1664_s27 = scalar_lea.hbm %s2312_s1, 128 }
  0x1f   : > { %s1659_s16 = scalar_lea.hbm %s1907_s25, 64  ;;  %p1665_p4 = scmp.lt.u32.totalorder %s1907_s25, %s2312_s1 }
  0x20   : > { %p1660_p3 = scmp.ne.s32.totalorder %s1907_s25, %s1659_s16  ;;  %p1666_p10 = scmp.lt.u32.totalorder %s1664_s27, %s1659_s16 }
  0x21   : > { %p1668_p12 = scmp.lt.u32.totalorder %s1659_s16, %s1907_s25 }
  0x22   : > { %p1662_p6 = pnand %p1661_p5, %p1660_p3  ;;  %p1667_p13 = por %p1666_p10, %p1665_p4 }
  0x24   : > { %p1663_p7 = pneg %p1662_p6  ;;  %p1669_p1 = por %p1668_p12, %p1667_p13 }
  0x26   : > { %p1670_p2 = pnand %p1669_p1, %p1663_p7 }
  0x28   : > { %1673 = shalt.err (!%p1670_p2)
}
  0x29   : > { %s1674_s14 = scalar_lea.vmem %s1909_s26, 64  ;;  %s1773_s15 = smov [#allocation3]  }
  0x2a   : > { %p1675_p3 = scmp.ne.s32.totalorder %s1909_s26, %s1674_s14  ;;  %s1679_s28 = sshll.u32 %s1773_s15, 4  ;;  %s1680_s28 = int_to_ptr.vmem [resolvable:$false] %s1679_s28 }
  0x2b   : > { %s1681_s21 = scalar_lea.vmem %s1680_s28, 128  ;;  %p1682_p9 = scmp.lt.s32.totalorder %s1909_s26, %s1680_s28 }
  0x2c   : > { %p1677_p6 = pnand %p1675_p3, %p1661_p5  ;;  %p1683_p4 = scmp.lt.s32.totalorder %s1681_s21, %s1674_s14 }
  0x2e   : > { %p1678_p11 = pneg %p1677_p6  ;;  %p1684_p10 = por %p1683_p4, %p1682_p9 }
  0x30   : > { %p1685_p12 = pnand %p1684_p10, %p1678_p11 }
  0x32   : > { %1688 = shalt.err (!%p1685_p12)
}
  0x33   : > { %1601 = dma.hbm_to_vmem [thread:$0]  (!%p1913_p0), %s1907_s25, 64, %s1909_s26, %s372_s23  }
  0x34   : > { %p2314_p1 = scmp.lt.s32.totalorder %s1771_s22, 3  ;;  %p2315_p2 = scmp.ge.s32.totalorder %s1771_s22, 1 }
  0x36   : > { %p391_p5 = pnand %p2315_p2, %p2314_p1 }
  0x37   : > { %s1949_s16 = sand.u32 (!%p391_p5), 1, %s1755_s18  }
  0x38   : > { %394 = sbr.rel (%p391_p5) target bundleno = 810 (0x32a), region = 64  ;;  %s1261_s27 = sshll.u32 (!%p391_p5), %s1949_s16, 2 }
  0x39   : > { %s397_s24 = scalar_lea.sflag (!%p391_p5), [#allocation4], %s1949_s16  ;;  %s1953_s14 = scalar_lea.vmem (!%p391_p5), [#allocation3], %s1261_s27 }
  0x3f   : > { %1742 = dma.done.wait (%p1885_p8), %s397_s24, 64  }
  0x40   : > { %1744 = vsyncadd (%p1885_p8), %s397_s24, 4294967232  ;;  %p450_p9 = scmp.lt.s32.totalorder %s1763_s20, 1  ;;  %v482_v0 = vld [vmem:[%s2289_s2 + $0x80] sm:$0xff]  ;;  %v483_v1 = vld [vmem:[%s2289_s2 + $0x88] sm:$0xff]  ;;  %vm681_vm0 = vcmask 523264   ;;  %vm684_vm1 = vcmask 516096  }
  0x41   : > { %v466_v2 = vld [vmem:[%s2289_s2] sm:$0xff]  ;;  %v1462_v3 = vpack.c.bf16 %v483_v1, %v482_v0  ;;  %v467_v4 = vld [vmem:[%s2289_s2 + $0x8] sm:$0xff]  ;;  %v484_v5 = vld [vmem:[%s2289_s2 + $0x90] sm:$0xff]  ;;  %vm686_vm2 = vcmask 517121   ;;  %s1262_s23 = sshll.u32 %s1949_s16, 5  ;;  %s1301_s28 = sshll.u32 %s1763_s20, 9 }
  0x42   : > { %s451_s21 = scalar_select %p450_p9, %s1763_s20, 1  ;;  %v485_v6 = vld [vmem:[%s2289_s2 + $0x98] sm:$0xff]  ;;  %v1464_v7 = vpack.c.bf16 %v467_v4, %v466_v2  ;;  %v468_v9 = vld [vmem:[%s2289_s2 + $0x10] sm:$0xff]  ;;  %v486_v11 = vld [vmem:[%s2289_s2 + $0xa0] sm:$0xff] }
  0x43   : > { %v1466_v8 = vpack.c.bf16 %v485_v6, %v484_v5  ;;  %v469_v10 = vld [vmem:[%s2289_s2 + $0x18] sm:$0xff]  ;;  %1463 = vmatprep.subr.bf16.mxu0 %v1462_v3  ;;  %1495 = vmatprep.subr.bf16.mxu1 %v1462_v3  ;;  %v487_v12 = vld [vmem:[%s2289_s2 + $0xa8] sm:$0xff]  ;;  %v470_v15 = vld [vmem:[%s2289_s2 + $0x20] sm:$0xff]  ;;  %s2238_s29 = scalar_lea.hbm %s2298_s11, %s1301_s28  ;;  %s1129_s20 = scalar_lea.sflag [#allocation5], %s1949_s16 }
  0x44   : > { %1465 = vmatpush3.bf16.msra.mxu0 %v1464_v7  ;;  %1497 = vmatpush3.bf16.msra.mxu1 %v1464_v7  ;;  %v1468_v13 = vpack.c.bf16 %v469_v10, %v468_v9  ;;  %s1300_s25 = sshll.u32 %s451_s21, 5  ;;  %v1470_v14 = vpack.c.bf16 %v487_v12, %v486_v11  ;;  %v471_v16 = vld [vmem:[%s2289_s2 + $0x28] sm:$0xff]  ;;  %v488_v17 = vld [vmem:[%s2289_s2 + $0xb0] sm:$0xff]  ;;  %v489_v18 = vld [vmem:[%s2289_s2 + $0xb8] sm:$0xff]  ;;  %p2316_p11 = scmp.ne.s32.totalorder %s2309_s30, 0 }
  0x45   : > { %1467 = vmatprep.subr.bf16.mxu0 %v1466_v8  ;;  %1499 = vmatprep.subr.bf16.mxu1 %v1466_v8  ;;  %s2006_s19 = scalar_lea.vmem %s2287_s0, %s1300_s25  ;;  %v1472_v19 = vpack.c.bf16 %v471_v16, %v470_v15  ;;  %v1474_v20 = vpack.c.bf16 %v489_v18, %v488_v17  ;;  %v472_v21 = vld [vmem:[%s2289_s2 + $0x30] sm:$0xff]  ;;  %v473_v22 = vld [vmem:[%s2289_s2 + $0x38] sm:$0xff]  ;;  %v490_v23 = vld [vmem:[%s2289_s2 + $0xc0] sm:$0xff]  ;;  %s1775_s1 = smov [#allocation6]  }
  0x46   : > { %v491_v24 = vld [vmem:[%s2289_s2 + $0xc8] sm:$0xff]  ;;  %v1267_v26 = vld.sshfl [vmem:[%s1953_s14] sm:$0x33 pattern:$0x76325410]  ;;  %v1476_v27 = vpack.c.bf16 %v473_v22, %v472_v21  ;;  %v492_v32 = vld [vmem:[%s2289_s2 + $0xd0] sm:$0xff] }
  0x47   : > { %v2021_v25 = vld [vmem:[%s2006_s19 + $0x8] sm:$0xff]  ;;  %v601_v28 = vcombine.high %v1267_v26, %v1267_v26  ;;  %v1478_v29 = vpack.c.bf16 %v491_v24, %v490_v23  ;;  %v474_v30 = vld [vmem:[%s2289_s2 + $0x40] sm:$0xff]  ;;  %v493_v33 = vld [vmem:[%s2289_s2 + $0xd8] sm:$0xff]  ;;  %s448_s14 = scalar_lea.vmem [#allocation6], %s1262_s23  ;;  %s1693_s21 = sshll.u32 %s1775_s1, 4  ;;  %s1694_s21 = int_to_ptr.vmem [resolvable:$false] %s1693_s21 }
  0x48   : > { %1469 = vmatpush3.bf16.msra.mxu0 %v1468_v13  ;;  %1501 = vmatpush3.bf16.msra.mxu1 %v1468_v13  ;;  %v475_v31 = vld [vmem:[%s2289_s2 + $0x48] sm:$0xff]  ;;  %v1482_v35 = vpack.c.bf16 %v493_v33, %v492_v32  ;;  %v476_v36 = vld [vmem:[%s2289_s2 + $0x50] sm:$0xff]  ;;  %v477_v37 = vld [vmem:[%s2289_s2 + $0x58] sm:$0xff]  ;;  %s1145_s15 = sshll.u32 %s448_s14, 4  ;;  %s1695_s24 = scalar_lea.vmem %s1694_s21, 1024  ;;  %s2232_s15 = int_to_ptr.vmem [resolvable:$true] %s1145_s15 }
  0x49   : > { %1471 = vmatprep.subr.bf16.mxu0 %v1470_v14  ;;  %1503 = vmatprep.subr.bf16.mxu1 %v1470_v14  ;;  %v1480_v34 = vpack.c.bf16 %v475_v31, %v474_v30  ;;  %v494_v38 = vld [vmem:[%s2289_s2 + $0xe0] sm:$0xff]  ;;  %v495_v39 = vld [vmem:[%s2289_s2 + $0xe8] sm:$0xff]  ;;  %v1484_v40 = vpack.c.bf16 %v477_v37, %v476_v36  ;;  %v496_v44 = vld [vmem:[%s2289_s2 + $0xf0] sm:$0xff]  ;;  %p1696_p13 = scmp.lt.s32.totalorder %s2232_s15, %s1694_s21 }
  0x4a   : > { %562 = vmatprep.mubr.f32.mxu0 %v2021_v25  ;;  %668 = vmatprep.mubr.f32.mxu1 %v601_v28  ;;  %v1486_v41 = vpack.c.bf16 %v495_v39, %v494_v38  ;;  %v478_v42 = vld [vmem:[%s2289_s2 + $0x60] sm:$0xff]  ;;  %v479_v43 = vld [vmem:[%s2289_s2 + $0x68] sm:$0xff]  ;;  %v497_v45 = vld [vmem:[%s2289_s2 + $0xf8] sm:$0xff] }
  0x4b   : > { %v1488_v46 = vpack.c.bf16 %v479_v43, %v478_v42  ;;  %v1490_v47 = vpack.c.bf16 %v497_v45, %v496_v44  ;;  %v480_v48 = vld [vmem:[%s2289_s2 + $0x70] sm:$0xff]  ;;  %v481_v49 = vld [vmem:[%s2289_s2 + $0x78] sm:$0xff]  ;;  %v2068_v51 = vld [vmem:[%s2006_s19] sm:$0xff] }
  0x4c   : > { %1473 = vmatpush3.bf16.msra.mxu0 %v1472_v19  ;;  %1505 = vmatpush3.bf16.msra.mxu1 %v1472_v19  ;;  %v1492_v50 = vpack.c.bf16 %v481_v49, %v480_v48  ;;  %v2071_v52 = vld [vmem:[%s2006_s19 + $0x18] sm:$0xff]  ;;  %v2076_v53 = vld [vmem:[%s2006_s19 + $0x10] sm:$0xff]  ;;  %v690_v54 = vld [vmem:[%s2290_s3] sm:$0xff]  ;;  %s1689_s19 = scalar_lea.vmem %s2232_s15, 512 }
  0x4d   : > { %1475 = vmatprep.subr.bf16.mxu0 %v1474_v20  ;;  %1507 = vmatprep.subr.bf16.mxu1 %v1474_v20  ;;  %v691_v55 = vld [vmem:[%s2290_s3 + $0x8] sm:$0xff]  ;;  %v1268_v57 = vld [vmem:[%s2290_s3 + $0x40] sm:$0xff]  ;;  %v692_v60 = vld [vmem:[%s2290_s3 + $0x10] sm:$0xff]  ;;  %p1690_p8 = scmp.ne.s32.totalorder %s2232_s15, %s1689_s19  ;;  %p1697_p3 = scmp.lt.s32.totalorder %s1695_s24, %s1689_s19 }
  0x4e   : > { %v1542_v56 = vpack.c.bf16 %v691_v55, %v690_v54  ;;  %v1269_v58 = vld [vmem:[%s2290_s3 + $0x48] sm:$0xff]  ;;  %v693_v61 = vld [vmem:[%s2290_s3 + $0x18] sm:$0xff]  ;;  %v1270_v63 = vld [vmem:[%s2290_s3 + $0x50] sm:$0xff] }
  0x4f   : > { %v1526_v59 = vpack.c.bf16 %v1269_v58, %v1268_v57  ;;  %v1546_v62 = vpack.c.bf16 %v693_v61, %v692_v60  ;;  %v1271_v0 = vld [vmem:[%s2290_s3 + $0x58] sm:$0xff]  ;;  %v694_v2 = vld [vmem:[%s2290_s3 + $0x20] sm:$0xff]  ;;  %v695_v3 = vld [vmem:[%s2290_s3 + $0x28] sm:$0xff]  ;;  %p1691_p0 = pnand %p1690_p8, %p2316_p11  ;;  %p1698_p6 = por %p1697_p3, %p1696_p13 }
  0x50   : > { %1477 = vmatpush3.bf16.msra.mxu0 %v1476_v27  ;;  %1509 = vmatpush3.bf16.msra.mxu1 %v1476_v27  ;;  %v1530_v1 = vpack.c.bf16 %v1271_v0, %v1270_v63  ;;  %v1550_v4 = vpack.c.bf16 %v695_v3, %v694_v2  ;;  %v1272_v5 = vld [vmem:[%s2290_s3 + $0x60] sm:$0xff]  ;;  %v1273_v6 = vld [vmem:[%s2290_s3 + $0x68] sm:$0xff]  ;;  %v696_v8 = vld [vmem:[%s2290_s3 + $0x30] sm:$0xff] }
  0x51   : > { %1479 = vmatprep.subr.bf16.mxu0 %v1478_v29  ;;  %1511 = vmatprep.subr.bf16.mxu1 %v1478_v29  ;;  %v1534_v7 = vpack.c.bf16 %v1273_v6, %v1272_v5  ;;  %v697_v9 = vld [vmem:[%s2290_s3 + $0x38] sm:$0xff]  ;;  %v1274_v10 = vld [vmem:[%s2290_s3 + $0x70] sm:$0xff]  ;;  %v1280_v14 = vld [vmem:[%s2290_s3 + $0x80] sm:$0xff]  ;;  %p1692_p7 = pneg %p1691_p0 }
  0x52   : > { %v1554_v11 = vpack.c.bf16 %v697_v9, %v696_v8  ;;  %v1275_v12 = vld [vmem:[%s2290_s3 + $0x78] sm:$0xff]  ;;  %v1281_v15 = vld [vmem:[%s2290_s3 + $0x88] sm:$0xff]  ;;  %v1265_v20 = vld [vmem:[%s2292_s5] ss:$0 sm:$0xff] }
  0x53   : > { %v1538_v13 = vpack.c.bf16 %v1275_v12, %v1274_v10  ;;  %v1558_v16 = vpack.c.bf16 %v1281_v15, %v1280_v14  ;;  %v1266_v24 = vld [vmem:[%s2293_s6] ss:$0 sm:$0xff]  ;;  %v1285_v45 = vld [vmem:[%s2290_s3 + $0xa8] sm:$0xff]  ;;  %v1287_v54 = vld [vmem:[%s2290_s3 + $0xb8] sm:$0xff]  ;;  %p1699_p4 = pnand %p1698_p6, %p1692_p7 }
  0x54   : > { %1481 = vmatpush3.bf16.msra.mxu0 %v1480_v34  ;;  %1513 = vmatpush3.bf16.msra.mxu1 %v1480_v34  ;;  %v1284_v44 = vld [vmem:[%s2290_s3 + $0xa0] sm:$0xff]  ;;  %v986_v57 = vld [vmem:[%s2291_s4 + $0x8] sm:$0xff]  ;;  %v988_v58 = vld [vmem:[%s2291_s4 + $0x18] sm:$0xff] }
  0x55   : > { %1483 = vmatprep.subr.bf16.mxu0 %v1482_v35  ;;  %1515 = vmatprep.subr.bf16.mxu1 %v1482_v35  ;;  %v1566_v49 = vpack.c.bf16 %v1285_v45, %v1284_v44  ;;  %v1574_v60 = vpack.c.bf16 %v988_v58, %v986_v57  ;;  %v987_v61 = vld [vmem:[%s2291_s4 + $0x10] sm:$0xff]  ;;  %v992_v63 = vld [vmem:[%s2291_s4 + $0x38] sm:$0xff]  ;;  %v989_v2 = vld [vmem:[%s2291_s4 + $0x20] sm:$0xff] }
  0x56   : > { %v991_v3 = vld [vmem:[%s2291_s4 + $0x30] sm:$0xff]  ;;  %v994_v5 = vld [vmem:[%s2291_s4 + $0x48] sm:$0xff]  ;;  %v996_v6 = vld [vmem:[%s2291_s4 + $0x58] sm:$0xff] }
  0x57   : > { %v993_v8 = vld [vmem:[%s2291_s4 + $0x40] sm:$0xff]  ;;  %v995_v9 = vld [vmem:[%s2291_s4 + $0x50] sm:$0xff]  ;;  %v1000_v12 = vld [vmem:[%s2291_s4 + $0x78] sm:$0xff] }
  0x58   : > { %1485 = vmatpush3.bf16.msra.mxu0 %v1484_v40  ;;  %1517 = vmatpush3.bf16.msra.mxu1 %v1484_v40  ;;  %v1282_v40 = vld [vmem:[%s2290_s3 + $0x90] sm:$0xff]  ;;  %v1584_v10 = vpack.c.bf16 %v995_v9, %v993_v8  ;;  %v997_v14 = vld [vmem:[%s2291_s4 + $0x60] sm:$0xff] }
  0x59   : > { %1487 = vmatprep.subr.bf16.mxu0 %v1486_v41  ;;  %1519 = vmatprep.subr.bf16.mxu1 %v1486_v41  ;;  %v1283_v41 = vld [vmem:[%s2290_s3 + $0x98] sm:$0xff]  ;;  %v999_v15 = vld [vmem:[%s2291_s4 + $0x70] sm:$0xff] }
  0x5a   : > { %v1562_v43 = vpack.c.bf16 %v1283_v41, %v1282_v40 }
  0x5c   : > { %1489 = vmatpush3.bf16.msra.mxu0 %v1488_v46  ;;  %1521 = vmatpush3.bf16.msra.mxu1 %v1488_v46 }
  0x5d   : > { %1491 = vmatprep.subr.bf16.mxu0 %v1490_v47  ;;  %1523 = vmatprep.subr.bf16.mxu1 %v1490_v47 }
  0x60   : > { %1493 = vmatpush3.bf16.msra.mxu0 %v1492_v50  ;;  %1525 = vmatpush3.bf16.msra.mxu1 %v1492_v50  ;;  %v1286_v50 = vld [vmem:[%s2290_s3 + $0xb0] sm:$0xff] }
  0x61   : > { %1543 = vmatprep.subr.bf16.mxu0 %v1542_v56  ;;  %1527 = vmatprep.subr.bf16.mxu1 %v1526_v59  ;;  %v1570_v55 = vpack.c.bf16 %v1287_v54, %v1286_v50 }
  0x63   : > { %563 = vmatmul.mubr.f32.vlgmr.msra.gmra.mrb[0].mxu0 %v2068_v51  ;;  %669 = vmatmul.mubr.f32.vlgmr.msra.gmra.mrb[0].mxu1 %v1267_v26 }
  0x64   : > { %567 = vmatprep.mubr.f32.mxu0 %v2071_v52  ;;  %1545 = vmatpush3.bf16.msra.mxu0 %v1542_v56 }
  0x65   : > { %1529 = vmatpush3.bf16.msra.mxu1 %v1526_v59  ;;  %1547 = vmatprep.subr.bf16.mxu0 %v1546_v62  ;;  %v985_v59 = vld [vmem:[%s2291_s4] sm:$0xff] }
  0x66   : > { %1531 = vmatprep.subr.bf16.mxu1 %v1530_v1  ;;  %v1576_v0 = vpack.c.bf16 %v987_v61, %v985_v59 }
  0x67   : > { %568 = vmatmul.mubr.f32.gmra.mrb[2].mxu0 %v2076_v53 }
  0x68   : > { %1549 = vmatpush3.bf16.msra.mxu0 %v1546_v62  ;;  %v990_v62 = vld [vmem:[%s2291_s4 + $0x28] sm:$0xff] }
  0x69   : > { %1533 = vmatpush3.bf16.msra.mxu1 %v1530_v1  ;;  %1551 = vmatprep.subr.bf16.mxu0 %v1550_v4  ;;  %v1578_v1 = vpack.c.bf16 %v992_v63, %v990_v62 }
  0x6a   : > { %1535 = vmatprep.subr.bf16.mxu1 %v1534_v7 }
  0x6c   : > { %1553 = vmatpush3.bf16.msra.mxu0 %v1550_v4  ;;  %v1580_v4 = vpack.c.bf16 %v991_v3, %v989_v2 }
  0x6d   : > { %1537 = vmatpush3.bf16.msra.mxu1 %v1534_v7  ;;  %1555 = vmatprep.subr.bf16.mxu0 %v1554_v11  ;;  %v1582_v7 = vpack.c.bf16 %v996_v6, %v994_v5 }
  0x6e   : > { %1539 = vmatprep.subr.bf16.mxu1 %v1538_v13 }
  0x70   : > { %1557 = vmatpush3.bf16.msra.mxu0 %v1554_v11  ;;  %v998_v11 = vld [vmem:[%s2291_s4 + $0x68] sm:$0xff] }
  0x71   : > { %1541 = vmatpush3.bf16.msra.mxu1 %v1538_v13  ;;  %1559 = vmatprep.subr.bf16.mxu0 %v1558_v16  ;;  %v1586_v13 = vpack.c.bf16 %v1000_v12, %v998_v11 }
  0x72   : > { %1575 = vmatprep.subr.bf16.mxu1 %v1574_v60 }
 0x136   : > { %v1334_v17 = vpop.f32.mrb[0].mxu0  ;;  %v1372_v18 = vpop.f32.mrb[0].mxu1 }
 0x137   : > { %v1335_v19 = vpop.f32.mrb[1].mxu0  ;;  %v1373_v21 = vpop.f32.mrb[1].mxu1 }
 0x138   : > { %v1336_v22 = vadd.f32 %v1335_v19, %v1334_v17  ;;  %v1374_v23 = vadd.f32 %v1373_v21, %v1372_v18  ;;  %v1774_v17 = vmov 0.0  }
 0x13a   : > { %v580_v26 = vmul.f32 %v1336_v22, %v1265_v20  ;;  %v674_v27 = vmul.f32 %v1374_v23, %v1265_v20  ;;  %v1337_v28 = vpop.f32.mrb[2].mxu0  ;;  %v1290_v22 = vld [vmem:[%s2294_s7] ss:$0 sm:$0xff] }
 0x13b   : > { %v1338_v29 = vpop.f32.mrb[3].mxu0 }
 0x13c   : > { %v589_v30 = vadd.f32 %v1266_v24, %v580_v26  ;;  %v675_v31 = vadd.f32 %v1266_v24, %v674_v27  ;;  %v1339_v32 = vadd.f32 %v1338_v29, %v1337_v28  ;;  %v1291_v26 = vld [vmem:[%s2295_s8] ss:$0 sm:$0xff] }
 0x13e   : > { %v591_v33 = vmax.f32 %v589_v30, 0.0  ;;  %v676_v34 = vmax.f32 %v675_v31, 0.0  ;;  %v581_v35 = vmul.f32 %v1339_v32, %v1265_v20 }
 0x140   : > { %682 = vst.msk [vmem:[#allocation2 + $0x8] sm:$0xff] %vm681_vm0, %v591_v33  ;;  %v680_v36 = vmul.f32 0.0, %v676_v34  ;;  %v590_v37 = vadd.f32 %v1266_v24, %v581_v35  ;;  %v1086_v33 = vlaneseq }
 0x142   : > { %685 = vst.msk [vmem:[#allocation2 + $0x7] sm:$0x1] %vm684_vm1, %v680_v36  ;;  %v592_v38 = vmax.f32 %v590_v37, 0.0  ;;  %v1087_v34 = vshrl.u32 %v1086_v33, 7 }
 0x143   : > { %687 = vst.msk [vmem:[#allocation2 + $0x17] sm:$0x2] %vm686_vm2, %v680_v36  ;;  %v1084_v36 = vld [vmem:[%s2296_s9] sm:$0x3] }
 0x144   : > { %683 = vst.msk [vmem:[#allocation2 + $0x10] sm:$0xff] %vm681_vm0, %v592_v38  ;;  %v1088_v35 = vsub.s32 0, %v1087_v34  ;;  %v1092_v37 = vsub.s32 1, %v1087_v34  ;;  %v1100_v38 = vld [vmem:[%s2297_s10] sm:$0x3] }
 0x146   : > { %v1093_v40 = vrot.slane %v1084_v36, %v1092_v37  ;;  %v1105_v41 = vrot.slane %v1100_v38, %v1088_v35 }
 0x147   : > { %v698_v39 = vld [vmem:[#allocation2 + $0x8] sm:$0xff] }
 0x148   : > { %1421 = vmatprep.mubr.msk.f32.mxu1 %vm681_vm0, %v698_v39  ;;  %v1089_v39 = vrot.slane %v1084_v36, %v1088_v35 }
 0x149   : > { %v688_v42 = vld [vmem:[#allocation2 + $0x7] sm:$0xff] }
 0x14a   : > { %1440 = vmatprep.mubr.msk.f32.mxu0 %vm681_vm0, %v688_v42 }
 0x14b   : > { %v699_v46 = vld [vmem:[#allocation2 + $0x10] sm:$0xff] }
 0x14c   : > { %v689_v47 = vld [vmem:[#allocation2 + $0xf] sm:$0xff]  ;;  %1422 = vmatmul.mubr.msk.f32.vlgmr.msra.gmra.mrb[2].mxu1 %vm681_vm0, %v699_v46 }
 0x14d   : > { %v871_v48 = vld [vmem:[#allocation2 + $0x9] sm:$0xff]  ;;  %1441 = vmatmul.mubr.msk.f32.vlgmr.msra.gmra.mrb[4].mxu0 %vm681_vm0, %v689_v47  ;;  %v872_v56 = vld [vmem:[#allocation2 + $0x11] sm:$0xff]  ;;  %1577 = vmatpush1.bf16.msra.mxu1 %v1576_v0 }
 0x14e   : > { %1561 = vmatpush3.bf16.msra.mxu0 %v1558_v16  ;;  %1459 = vmatprep.mubr.msk.f32.mxu0 %vm681_vm0, %v871_v48  ;;  %v1588_v16 = vpack.c.bf16 %v999_v15, %v997_v14 }
 0x14f   : > { %1563 = vmatprep.subr.bf16.mxu0 %v1562_v43  ;;  %1579 = vmatprep.subr.bf16.mxu1 %v1578_v1 }
 0x150   : > { %1071 = vmatprep.mubr.f32.mxu1 %v1774_v17 }
 0x151   : > { %1581 = vmatpush1.bf16.msra.mxu1 %v1580_v4 }
 0x152   : > { %1565 = vmatpush3.bf16.msra.mxu0 %v1562_v43  ;;  %1583 = vmatprep.subr.bf16.mxu1 %v1582_v7  ;;  %v1109_v43 = vrot.slane %v1100_v38, %v1092_v37 }
 0x153   : > { %1567 = vmatprep.subr.bf16.mxu0 %v1566_v49 }
 0x155   : > { %1585 = vmatpush1.bf16.msra.mxu1 %v1584_v10 }
 0x156   : > { %1569 = vmatpush3.bf16.msra.mxu0 %v1566_v49  ;;  %1587 = vmatprep.subr.bf16.mxu1 %v1586_v13 }
 0x157   : > { %1571 = vmatprep.subr.bf16.mxu0 %v1570_v55 }
 0x159   : > { %1589 = vmatpush1.bf16.msra.mxu1 %v1588_v16 }
 0x15a   : > { %1573 = vmatpush3.bf16.msra.mxu0 %v1570_v55 }
 0x15d   : > { %1460 = vmatmul.mubr.msk.f32.vlgmr.msra.gmra.mrb[4].mxu0 %vm681_vm0, %v872_v56 }
 0x21f   : > { %v1423_v18 = vpop.f32.mrb[2].mxu1 }
 0x220   : > { %v781_v19 = vpop.f32.mrb[3].mxu1 }
 0x230   : > { %v1461_v20 = vpop.f32.mrb[4].mxu0 }
 0x231   : > { %v1590_v21 = vadd.f32 %v1461_v20, %v1423_v18  ;;  %v954_v23 = vpop.f32.mrb[5].mxu0 }
 0x232   : > { %v1591_v24 = vadd.f32 %v954_v23, %v781_v19 }
 0x233   : > { %v973_v27 = vmul.f32 %v1590_v21, %v1290_v22 }
 0x234   : > { %v972_v28 = vmul.f32 %v1591_v24, %v1290_v22 }
 0x235   : > { %v982_v30 = vadd.f32 %v1291_v26, %v973_v27 }
 0x236   : > { %v981_v29 = vadd.f32 %v1291_v26, %v972_v28 }
 0x237   : > { %v984_v32 = vmax.f32 %v982_v30, 0.0 }
 0x238   : > { %v983_v31 = vmax.f32 %v981_v29, 0.0 }
 0x23a   : > { %1292 = vmatmul.mubr.msk.f32.vlgmr.msra.gmra.mrb[4].mxu1 %vm681_vm0, %v983_v31 }
 0x23b   : > { %1077 = vmatprep.mubr.f32.mxu1 %v1774_v17 }
 0x23e   : > { %1293 = vmatmul.mubr.msk.f32.gmra.mrb[6].mxu1 %vm681_vm0, %v984_v32 }
 0x30d   : > { %v1073_v42 = vpop.f32.mrb[4].mxu1 }
 0x30e   : > { %v1096_v44 = vmul.f32 %v1089_v39, %v1073_v42  ;;  %v1075_v45 = vpop.f32.mrb[5].mxu1 }
 0x30f   : > { %v1097_v46 = vmul.f32 %v1093_v40, %v1075_v45 }
 0x310   : > { %v1112_v47 = vadd.f32 %v1105_v41, %v1096_v44 }
 0x311   : > { %v1113_v48 = vadd.f32 %v1109_v43, %v1097_v46  ;;  %v1079_v49 = vpop.f32.mrb[6].mxu1 }
 0x312   : > { %v1116_v50 = vadd.f32 %v1112_v47, %v2068_v51  ;;  %v1098_v54 = vmul.f32 %v1089_v39, %v1079_v49  ;;  %v1081_v55 = vpop.f32.mrb[7].mxu1 }
 0x313   : > { %v1117_v56 = vadd.f32 %v1113_v48, %v2021_v25  ;;  %v1099_v57 = vmul.f32 %v1093_v40, %v1081_v55 }
 0x314   : > { %v1120_v58 = vmax.f32 %v1116_v50, 0.0  ;;  %v1114_v59 = vadd.f32 %v1105_v41, %v1098_v54 }
 0x315   : > { %v1121_v60 = vmax.f32 %v1117_v56, 0.0  ;;  %v1115_v61 = vadd.f32 %v1109_v43, %v1099_v57 }
 0x316   : > { %1124 = vst [vmem:[%s448_s14] sm:$0xff] %v1120_v58  ;;  %v1118_v62 = vadd.f32 %v1114_v59, %v2076_v53 }
 0x317   : > { %1125 = vst [vmem:[%s448_s14 + $0x8] sm:$0xff] %v1121_v60  ;;  %v1119_v25 = vadd.f32 %v1115_v61, %v2071_v52 }
 0x318   : > { %v1122_v51 = vmax.f32 %v1118_v62, 0.0 }
 0x319   : > { %v1123_v63 = vmax.f32 %v1119_v25, 0.0 }
 0x31a   : > { %1126 = vst [vmem:[%s448_s14 + $0x10] sm:$0xff] %v1122_v51 }
 0x31b   : > { %1127 = vst [vmem:[%s448_s14 + $0x18] sm:$0xff] %v1123_v63 }
 0x31c   : > { %1702 = shalt.err (!%p1699_p4)
}
 0x31d   : > { %s1703_s12 = scalar_lea.hbm %s2238_s29, 512  ;;  %s1707_s14 = scalar_lea.hbm %s2298_s11, 1024 }
 0x31e   : > { %p1704_p10 = scmp.ne.s32.totalorder %s2238_s29, %s1703_s12  ;;  %p1708_p2 = scmp.lt.u32.totalorder %s2238_s29, %s2298_s11 }
 0x31f   : > { %p1709_p5 = scmp.lt.u32.totalorder %s1707_s14, %s1703_s12  ;;  %p1711_p8 = scmp.lt.u32.totalorder %s1703_s12, %s2238_s29 }
 0x320   : > { %p1705_p12 = pnand %p1704_p10, %p2316_p11 }
 0x321   : > { %p1710_p9 = por %p1709_p5, %p1708_p2 }
 0x322   : > { %p1706_p1 = pneg %p1705_p12 }
 0x323   : > { %p1712_p0 = por %p1711_p8, %p1710_p9 }
 0x325   : > { %p1713_p7 = pnand %p1712_p0, %p1706_p1 }
 0x327   : > { %1716 = shalt.err (!%p1713_p7)
}
 0x328   : > { %s1776_s25 = smov 256   ;;  %s1777_s19 = smov 16  }
 0x329   : > { %1596 = dma.vmem_to_hbm [thread:$0]  (%p2316_p11), %s2232_s15, 512, %s2238_s29, %s1129_s20, %s1776_s25, %s1776_s25, %s1777_s19  }
 0x32a PF: > { %s1160_s1 = sand.u32 1, %s1751_s17   ;;  %p2317_p13 = scmp.ne.s32.totalorder %s2311_s13, 0 }
 0x32b   : > { %p2318_p3 = scmp.ge.s32.totalorder %s1771_s22, 2  ;;  %s1161_s21 = scalar_lea.sflag [#allocation5], %s1160_s1 }
 0x32d   : > { %p1603_p6 = pnand %p2318_p3, %p2317_p13 }
 0x32f   : > { %1746 = dma.done.wait (!%p1603_p6), %s1161_s21, 512  }
 0x330   : > { %1748 = vsyncadd (!%p1603_p6), %s1161_s21, 4294966784  ;;  %s27_s22 = sadd.s32 1, %s1771_s22   ;;  %s2319_s24 = sld [smem:[#allocation9_spill]] }
 0x331   : > { %p24_p4 = scmp.ge.s32.totalorder %s27_s22, 4   ;;  %s2320_s19 = sld [smem:[#allocation12_spill]] }
 0x332   : > { %s2321_s20 = sld [smem:[#allocation10_spill]]  ;;  %s2322_s21 = sld [smem:[#allocation11_spill]] }
 0x333   : > { %s2323_s17 = smov %s1755_s18  ;;  %26 = sbr.rel (!%p24_p4) target bundleno = 8 (0x8), region = 114 }
 0x336   : > { %s2324_s18 = smov %s2319_s24 }
 0x33a   :  { %1166 = vsyncpa [#allocation4], 1 }
 0x33b   :  { %1168 = vsyncpa [#allocation4 + $0x1], 1 }
 0x33c   :  { %1169 = vsyncpa [#allocation5], 1 }
 0x33d   :  { %1171 = vsyncpa [#allocation5 + $0x1], 1 }

</bundles_post_ra>
